<compile_context>
chip_gen: v6e
topology: v6e:2x2x1
jax: 0.10.0
libtpu: 0.0.40
codegen_flags: <defaults>
</compile_context>

<pallas_src>
import functools

import jax
import jax.numpy as jnp
from jax.experimental import pallas as pl
from jax.experimental.pallas import tpu as pltpu

_MIB = 1024 * 1024


# ---------------------------------------------------------------------------
# helpers
# ---------------------------------------------------------------------------
def _round_up(n, m):
    return ((n + m - 1) // m) * m


def _vmem_capacity_bytes():
    """Per-TensorCore VMEM capacity (v5e/v6e: 128 MiB, v7x: 64 MiB/TC)."""
    try:
        cap = int(pltpu.get_tpu_info().vmem_capacity_bytes)
        if cap > 0:
            return cap
    except Exception:
        pass
    return 64 * _MIB  # conservative default (v7x per-TC)


def _vmem_limit_bytes():
    # ~75% of per-core VMEM: ~96 MiB on v5e/v6e, ~48 MiB on v7x.  Budgeted per
    # TensorCore so megacore sharding (duplicated resident weights) stays safe.
    return int(_vmem_capacity_bytes() * 3 // 4)


def _vmem_tiling_budget():
    return max(16 * _MIB, _vmem_limit_bytes() - 8 * _MIB)


def _sublane_packing(dtype):
    # 8 for 4-byte, 16 for 2-byte, 32 for 1-byte dtypes.
    return 8 * max(1, 4 // max(1, jnp.dtype(dtype).itemsize))


def _auto_tile_rows(rows, per_row_bytes, resident_bytes, requested, budget, packing):
    """Largest row tile <= requested keeping the working set under budget."""
    tr = _round_up(max(requested, packing), packing)
    tr = min(tr, _round_up(max(rows, 1), packing))
    while tr > packing and resident_bytes + tr * per_row_bytes > budget:
        tr = max(packing, _round_up(tr // 2, packing))
    return tr


def _auto_tile_cols(dim_p, dout_p, w_itemsize, budget):
    """Output-dim tile: bound a single weight-tile copy to ~1/3 of the budget
    (room for x/out streaming even if single-buffering is unavailable);
    256-multiples feed the full-width MXU on v6e/v7x."""
    tn = dout_p
    while tn > 256 and dim_p * tn * w_itemsize > budget // 3:
        tn = _round_up(tn // 2, 256)
    return min(tn, dout_p)


def _resident_spec(block_shape, index_map):
    """BlockSpec for operands whose block index is constant across the (inner)
    row axis: request single buffering to halve their VMEM footprint."""
    buffered = getattr(pl, "Buffered", None)
    if buffered is not None:
        try:
            return pl.BlockSpec(block_shape, index_map, pipeline_mode=buffered(1))
        except TypeError:
            pass
    return pl.BlockSpec(block_shape, index_map)


# ---------------------------------------------------------------------------
# Fused kernel: LayerNorm (affine folded into w/b) + matmul + bias.
# ---------------------------------------------------------------------------
def _prenorm_linear_kernel(x_ref, w_ref, b_ref, o_ref, *, eps, dim,
                           lanes_padded, mxu_dtype):
    x = x_ref[...].astype(jnp.float32)                        # (tr, dim_p)
    inv_dim = 1.0 / dim
    mean = jnp.sum(x, axis=-1, keepdims=True) * inv_dim
    if lanes_padded:
        # Padded lanes of x are exactly zero -> both sums are exact; one-pass
        # variance avoids re-masking the centered tile (no iota/where).
        var = jnp.maximum(
            jnp.sum(x * x, axis=-1, keepdims=True) * inv_dim - mean * mean, 0.0)
    else:
        xc = x - mean
        var = jnp.sum(xc * xc, axis=-1, keepdims=True) * inv_dim
    inv = jax.lax.rsqrt(var + eps)
    # gamma/beta are folded into w/b in the wrapper.  Padded lanes of y hit the
    # zero-padded rows of w, so they contribute nothing to the product.
    y = (x - mean) * inv
    acc = jnp.dot(y.astype(mxu_dtype), w_ref[...],
                  preferred_element_type=jnp.float32)
    o_ref[...] = (acc + b_ref[...]).astype(o_ref.dtype)


def prenorm_linear_pallas(x, gamma, beta, w, b, *, eps=1e-5, tile_rows=512,
                          mxu_dtype=jnp.bfloat16):
    """out = LayerNorm(x) @ w + b fused into a single pallas_call.

    x: (..., dim);  w: (dim, dout);  b: (dout,).
    mxu_dtype=jnp.float32 is the escape hatch for f32-exact projections.
    """
    *lead, dim = x.shape
    dout = w.shape[1]
    rows = 1
    for s in lead:
        rows *= s
    x2d = x.reshape(rows, dim)

    dim_p = _round_up(dim, 128)
    dout_p = _round_up(dout, 128)
    lanes_padded = dim_p != dim

    # Fold the LayerNorm affine params into the projection (f32 math).
    w32 = w.astype(jnp.float32)
    w_fold = gamma.astype(jnp.float32)[:, None] * w32
    b_fold = beta.astype(jnp.float32) @ w32 + b.astype(jnp.float32)
    if lanes_padded or dout_p != dout:
        w_fold = jnp.pad(w_fold, ((0, dim_p - dim), (0, dout_p - dout)))
        b_fold = jnp.pad(b_fold, (0, dout_p - dout))
    w_p = w_fold.astype(mxu_dtype)
    b_p = b_fold.reshape(1, dout_p)
    x_p = jnp.pad(x2d, ((0, 0), (0, dim_p - dim))) if lanes_padded else x2d

    budget = _vmem_tiling_budget()
    packing = _sublane_packing(x.dtype)
    x_bytes = jnp.dtype(x.dtype).itemsize
    w_bytes = jnp.dtype(mxu_dtype).itemsize

    tn = _auto_tile_cols(dim_p, dout_p, w_bytes, budget)
    # Budget the weight as double-buffered (defensive), include f32 temporaries.
    resident = 2 * dim_p * tn * w_bytes + 2 * tn * 4
    per_row = 2 * dim_p * x_bytes + 2 * tn * x_bytes + 2 * dim_p * 4 + 2 * tn * 4
    tr = _auto_tile_rows(rows, per_row, resident, tile_rows, budget, packing)

    nj = pl.cdiv(dout_p, tn)   # output-dim tiles (outer: weight stays resident)
    ni = pl.cdiv(rows, tr)     # row tiles (inner, streamed)

    cost = pl.CostEstimate(
        flops=2 * rows * dim * dout + 8 * rows * dim,
        transcendentals=rows,
        bytes_accessed=(nj * rows * dim_p * x_bytes
                        + dim_p * dout_p * w_bytes
                        + rows * dout_p * x_bytes),
    )

    out = pl.pallas_call(
        functools.partial(_prenorm_linear_kernel, eps=eps, dim=dim,
                          lanes_padded=lanes_padded, mxu_dtype=mxu_dtype),
        out_shape=jax.ShapeDtypeStruct((rows, dout_p), x.dtype),
        grid_spec=pltpu.PrefetchScalarGridSpec(
            num_scalar_prefetch=0,
            grid=(nj, ni),
            in_specs=[
                pl.BlockSpec((tr, dim_p), lambda j, i: (i, 0)),
                _resident_spec((dim_p, tn), lambda j, i: (0, j)),
                _resident_spec((1, tn), lambda j, i: (0, j)),
            ],
            out_specs=pl.BlockSpec((tr, tn), lambda j, i: (i, j)),
        ),
        compiler_params=pltpu.CompilerParams(
            dimension_semantics=("parallel", "parallel"),
            vmem_limit_bytes=_vmem_limit_bytes()),
        cost_estimate=cost,
    )(x_p, w_p, b_p)

    if dout_p != dout:
        out = out[:, :dout]
    return out.reshape(*lead, dout)


# ---------------------------------------------------------------------------
# Standalone LayerNorm kernel (for PreNorm wrapping an arbitrary `fn`).
# ---------------------------------------------------------------------------
def _layernorm_kernel(x_ref, gamma_ref, beta_ref, o_ref, *, eps, dim, lanes_padded):
    x = x_ref[...].astype(jnp.float32)                        # (tr, dim_p)
    inv_dim = 1.0 / dim
    mean = jnp.sum(x, axis=-1, keepdims=True) * inv_dim
    if lanes_padded:
        var = jnp.maximum(
            jnp.sum(x * x, axis=-1, keepdims=True) * inv_dim - mean * mean, 0.0)
    else:
        xc = x - mean
        var = jnp.sum(xc * xc, axis=-1, keepdims=True) * inv_dim
    inv = jax.lax.rsqrt(var + eps)
    # gamma/beta are zero-padded -> padded output lanes are exactly zero.
    y = (x - mean) * inv * gamma_ref[...] + beta_ref[...]
    o_ref[...] = y.astype(o_ref.dtype)


def layernorm_pallas(x, gamma, beta, *, eps=1e-5, tile_rows=1024):
    *lead, dim = x.shape
    rows = 1
    for s in lead:
        rows *= s
    x2d = x.reshape(rows, dim)

    dim_p = _round_up(dim, 128)
    lanes_padded = dim_p != dim
    x_p = jnp.pad(x2d, ((0, 0), (0, dim_p - dim))) if lanes_padded else x2d
    gamma_p = jnp.pad(gamma.astype(jnp.float32), (0, dim_p - dim)).reshape(1, dim_p)
    beta_p = jnp.pad(beta.astype(jnp.float32), (0, dim_p - dim)).reshape(1, dim_p)

    budget = _vmem_tiling_budget()
    packing = _sublane_packing(x.dtype)
    x_bytes = jnp.dtype(x.dtype).itemsize
    resident = 4 * dim_p * 4                                   # gamma+beta (x2 defensive)
    per_row = 2 * dim_p * x_bytes + 2 * dim_p * x_bytes + 2 * dim_p * 4
    tr = _auto_tile_rows(rows, per_row, resident, tile_rows, budget, packing)
    ni = pl.cdiv(rows, tr)

    cost = pl.CostEstimate(
        flops=10 * rows * dim,
        transcendentals=rows,
        bytes_accessed=2 * rows * dim_p * x_bytes,
    )

    out = pl.pallas_call(
        functools.partial(_layernorm_kernel, eps=eps, dim=dim,
                          lanes_padded=lanes_padded),
        out_shape=jax.ShapeDtypeStruct((rows, dim_p), x.dtype),
        grid_spec=pltpu.PrefetchScalarGridSpec(
            num_scalar_prefetch=0,
            grid=(ni,),
            in_specs=[
                pl.BlockSpec((tr, dim_p), lambda i: (i, 0)),
                _resident_spec((1, dim_p), lambda i: (0, 0)),
                _resident_spec((1, dim_p), lambda i: (0, 0)),
            ],
            out_specs=pl.BlockSpec((tr, dim_p), lambda i: (i, 0)),
        ),
        compiler_params=pltpu.CompilerParams(
            dimension_semantics=("parallel",),
            vmem_limit_bytes=_vmem_limit_bytes()),
        cost_estimate=cost,
    )(x_p, gamma_p, beta_p)

    if lanes_padded:
        out = out[:, :dim]
    return out.reshape(*lead, dim)


# ---------------------------------------------------------------------------
# PreNorm: out = fn(LayerNorm(x), **kwargs).
# ---------------------------------------------------------------------------
def prenorm(x, gamma, beta, fn, *, eps=1e-5, **kwargs):
    # TODO(synk): an arbitrary `fn` cannot be fused in general; only the
    # LayerNorm runs as a Pallas kernel here.  Use prenorm_linear_pallas when
    # fn is a Linear projection.
    return fn(layernorm_pallas(x, gamma, beta, eps=eps), **kwargs)


if __name__ == "__main__":
    key = jax.random.PRNGKey(0)
    k_x, k_w, k_g, k_b, k_x2, k_w2 = jax.random.split(key, 6)

    def ref_ln(x, gamma, beta, eps=1e-5):
        mean = jnp.mean(x, axis=-1, keepdims=True)
        var = jnp.mean((x - mean) ** 2, axis=-1, keepdims=True)
        return (x - mean) / jnp.sqrt(var + eps) * gamma + beta

    # --- case 1: dim not a multiple of 128 (lane-padding + folded affine) ----
    batch, seq, dim, dout = 2, 8, 32, 32
    x = jax.random.normal(k_x, (batch, seq, dim), dtype=jnp.float32)
    gamma = 1.0 + 0.1 * jax.random.normal(k_g, (dim,), dtype=jnp.float32)
    beta = 0.1 * jax.random.normal(k_b, (dim,), dtype=jnp.float32)
    w = jax.random.normal(k_w, (dim, dout), dtype=jnp.float32) * 0.02
    bias = 0.01 * jnp.arange(dout, dtype=jnp.float32)

    out = prenorm_linear_pallas(x, gamma, beta, w, bias)     # fused fast path
    normed = layernorm_pallas(x, gamma, beta)                 # generic LN path
    jax.block_until_ready((out, normed))

    ref_norm = ref_ln(x, gamma, beta)
    ref = ref_norm @ w + bias
    assert out.shape == (batch, seq, dout)
    assert jnp.allclose(normed, ref_norm, atol=1e-5, rtol=1e-5), "layernorm mismatch"
    # Fused path uses bf16 MXU operands -> looser tolerance.
    assert jnp.allclose(out, ref, atol=2e-2, rtol=2e-2), "fused prenorm+linear mismatch"

    # --- case 2: dim % 128 == 0, ragged row count (no pads, partial block) ---
    b2, s2, dim2, dout2 = 3, 7, 128, 64
    x2 = jax.random.normal(k_x2, (b2, s2, dim2), dtype=jnp.float32)
    g2 = jnp.ones((dim2,), jnp.float32)
    bt2 = jnp.zeros((dim2,), jnp.float32)
    w2 = jax.random.normal(k_w2, (dim2, dout2), dtype=jnp.float32) * 0.05
    bias2 = jnp.zeros((dout2,), jnp.float32)

    out2 = prenorm(x2, g2, bt2, lambda h: h @ w2 + bias2)     # generic PreNorm
    out2f = prenorm_linear_pallas(x2, g2, bt2, w2, bias2)     # fused PreNorm
    jax.block_until_ready((out2, out2f))

    ref2 = ref_ln(x2, g2, bt2) @ w2 + bias2
    assert jnp.allclose(out2, ref2, atol=1e-4, rtol=1e-4), "generic prenorm mismatch"
    assert jnp.allclose(out2f, ref2, atol=3e-2, rtol=3e-2), "fused prenorm (ragged) mismatch"

    print("KERNEL_OK")
</pallas_src>

<mosaic_0001>
module attributes {stable_mosaic.version = 11 : i64} {
  func.func @_prenorm_linear_kernel(%arg0: i32, %arg1: i32, %arg2: memref<16x128xf32, #tpu.memory_space<vmem>>, %arg3: memref<128x128xbf16, #tpu.memory_space<vmem>>, %arg4: memref<1x128xf32, #tpu.memory_space<vmem>>, %arg5: memref<16x128xf32, #tpu.memory_space<vmem>>) attributes {dimension_semantics = [#tpu.dimension_semantics<parallel>, #tpu.dimension_semantics<parallel>], iteration_bounds = array<i64: 1, 1>, scalar_prefetch = 0 : i64, scratch_operands = 0 : i64, tpu.core_type = #tpu.core_type<tc>, window_params = [{transform_indices = @transform_0, window_bounds = array<i64: 16, 128>}, {pipeline_mode = #tpu.pipeline_mode<synchronous>, transform_indices = @transform_1, window_bounds = array<i64: 128, 128>}, {pipeline_mode = #tpu.pipeline_mode<synchronous>, transform_indices = @transform_2, window_bounds = array<i64: 1, 128>}, {transform_indices = @transform_3, window_bounds = array<i64: 16, 128>}]} {
    %c0 = arith.constant 0 : index
    %c0_0 = arith.constant 0 : index
    %0 = vector.load %arg2[%c0, %c0_0] : memref<16x128xf32, #tpu.memory_space<vmem>>, vector<16x128xf32>
    %cst = arith.constant dense<0.000000e+00> : vector<16xf32>
    %1 = vector.multi_reduction <add>, %0, %cst [1] : vector<16x128xf32> to vector<16xf32>
    %2 = vector.shape_cast %1 : vector<16xf32> to vector<16x1xf32>
    %cst_1 = arith.constant 3.125000e-02 : f32
    %3 = vector.broadcast %cst_1 : f32 to vector<16x1xf32>
    %4 = arith.mulf %2, %3 : vector<16x1xf32>
    %5 = arith.mulf %0, %0 : vector<16x128xf32>
    %cst_2 = arith.constant dense<0.000000e+00> : vector<16xf32>
    %6 = vector.multi_reduction <add>, %5, %cst_2 [1] : vector<16x128xf32> to vector<16xf32>
    %7 = vector.shape_cast %6 : vector<16xf32> to vector<16x1xf32>
    %cst_3 = arith.constant 3.125000e-02 : f32
    %8 = vector.broadcast %cst_3 : f32 to vector<16x1xf32>
    %9 = arith.mulf %7, %8 : vector<16x1xf32>
    %10 = arith.mulf %4, %4 : vector<16x1xf32>
    %11 = arith.subf %9, %10 : vector<16x1xf32>
    %cst_4 = arith.constant 0.000000e+00 : f32
    %12 = vector.broadcast %cst_4 : f32 to vector<16x1xf32>
    %13 = arith.maximumf %11, %12 : vector<16x1xf32>
    %cst_5 = arith.constant 9.99999974E-6 : f32
    %14 = vector.broadcast %cst_5 : f32 to vector<16x1xf32>
    %15 = arith.addf %13, %14 : vector<16x1xf32>
    %16 = math.rsqrt %15 : vector<16x1xf32>
    %17 = vector.broadcast %4 : vector<16x1xf32> to vector<16x128xf32>
    %18 = arith.subf %0, %17 : vector<16x128xf32>
    %19 = vector.broadcast %16 : vector<16x1xf32> to vector<16x128xf32>
    %20 = arith.mulf %18, %19 : vector<16x128xf32>
    %21 = arith.truncf %20 : vector<16x128xf32> to vector<16x128xbf16>
    %c0_6 = arith.constant 0 : index
    %c0_7 = arith.constant 0 : index
    %22 = vector.load %arg3[%c0_6, %c0_7] : memref<128x128xbf16, #tpu.memory_space<vmem>>, vector<128x128xbf16>
    %cst_8 = arith.constant dense<0.000000e+00> : vector<16x128xf32>
    %23 = tpu.matmul %21, %22, %cst_8 {dimension_numbers = #tpu.dot_dimension_numbers<[1], [0], [0], [1], [0, 0, 1, 1], [], []>} : vector<16x128xbf16>, vector<128x128xbf16>, vector<16x128xf32> -> vector<16x128xf32>
    %c0_9 = arith.constant 0 : index
    %c0_10 = arith.constant 0 : index
    %24 = vector.load %arg4[%c0_9, %c0_10] : memref<1x128xf32, #tpu.memory_space<vmem>>, vector<1x128xf32>
    %25 = vector.broadcast %24 : vector<1x128xf32> to vector<16x128xf32>
    %26 = arith.addf %23, %25 : vector<16x128xf32>
    %c0_11 = arith.constant 0 : index
    %c0_12 = arith.constant 0 : index
    %27 = vector.load %arg5[%c0_11, %c0_12] : memref<16x128xf32, #tpu.memory_space<vmem>>, vector<16x128xf32>
    tpu.vector_store %arg5[%c0_11, %c0_12], %26 {strides = array<i32>} : memref<16x128xf32, #tpu.memory_space<vmem>>, vector<16x128xf32>,
    return
  }
  func.func @transform_0(%arg0: i32, %arg1: i32) -> (i32, i32) {
    %c0_i32 = arith.constant 0 : i32
    %c0_i32_0 = arith.constant 0 : i32
    return %arg1, %c0_i32 : i32, i32
  }
  func.func @transform_1(%arg0: i32, %arg1: i32) -> (i32, i32) {
    %c0_i32 = arith.constant 0 : i32
    %c0_i32_0 = arith.constant 0 : i32
    return %c0_i32, %arg0 : i32, i32
  }
  func.func @transform_2(%arg0: i32, %arg1: i32) -> (i32, i32) {
    %c0_i32 = arith.constant 0 : i32
    %c0_i32_0 = arith.constant 0 : i32
    return %c0_i32, %arg0 : i32, i32
  }
  func.func @transform_3(%arg0: i32, %arg1: i32) -> (i32, i32) {
    %c0_i32 = arith.constant 0 : i32
    return %arg1, %arg0 : i32, i32
  }
}

</mosaic_0001>

<bundles_post_ra>
// kernel: tpu_custom_call.1
= control target key start
LH: loop header
LB: loop body
LE: loop exit
PB: predicated region body
PF: predicated region fallthrough
CT: control target
= control target key end

     0   :  { %8 = vsyncpa [#allocation3], 0  ;;  %s379_s0 = inlined_call_operand.hbm [shape: f32[16,128], index: 0, kind: input, shape index: {}]   ;;  %s380_s1 = inlined_call_operand.hbm [shape: bf16[128,128], index: 1, kind: input, shape index: {}]   ;;  %s381_s2 = inlined_call_operand.vmem [shape: f32[1,128], index: 2, kind: input, shape index: {}]   ;;  %s382_s3 = inlined_call_operand.hbm [shape: f32[16,128], index: 3, kind: output, shape index: {}]  }
   0x1   :  { %9 = vsyncpa [#allocation6], 0 }
   0x2   :  { %10 = vsyncpa [#allocation4], 0  ;;  %s332_s12 = smov [#allocation2]  }
   0x3   :  { %s16_s13 = sshll.u32 %s332_s12, 4  ;;  %s17_s13 = int_to_ptr.vmem [resolvable:$true] %s16_s13 }
   0x4   :  { %s274_s14 = scalar_lea.vmem %s17_s13, 256  ;;  %p279_p1 = scmp.lt.s32.totalorder %s17_s13, %s17_s13 }
   0x5   :  { %p275_p0 = scmp.ne.s32.totalorder %s17_s13, %s274_s14  ;;  %p280_p2 = scmp.lt.s32.totalorder %s274_s14, %s274_s14 }
   0x7   :  { %p281_p3 = por %p280_p2, %p279_p1 }
   0x9   :  { %p282_p4 = pnand %p281_p3, %p275_p0 }
   0xb   :  { %285 = shalt.err (!%p282_p4)
}
   0xc   :  { %s333_s15 = smov 128   ;;  %s334_s16 = smov 8  }
   0xd   :  { %22 = dma.hbm_to_vmem [thread:$0]  %s379_s0, 256, %s17_s13, [#allocation3], %s333_s15, %s333_s15, %s334_s16  }
   0xe   :  { %s335_s19 = smov [#allocation5]  }
   0xf   :  { %s28_s20 = sshll.u32 %s335_s19, 4  ;;  %s29_s20 = int_to_ptr.vmem [resolvable:$true] %s28_s20 }
  0x10   :  { %s294_s21 = scalar_lea.vmem %s29_s20, 1024  ;;  %p299_p6 = scmp.lt.s32.totalorder %s29_s20, %s29_s20 }
  0x11   :  { %p295_p5 = scmp.ne.s32.totalorder %s29_s20, %s294_s21  ;;  %p300_p7 = scmp.lt.s32.totalorder %s294_s21, %s294_s21 }
  0x13   :  { %p301_p8 = por %p300_p7, %p299_p6 }
  0x15   :  { %p302_p9 = pnand %p301_p8, %p295_p5 }
  0x17   :  { %305 = shalt.err (!%p302_p9)
}
  0x18   :  { %s336_s22 = smov 64   ;;  %s337_s23 = smov 4  }
  0x19   :  { %34 = dma.hbm_to_vmem [thread:$0]  %s380_s1, 1024, %s29_s20, [#allocation6], %s336_s22, %s336_s22, %s337_s23  }
  0x1a   :  { %326 = dma.done.wait [#allocation3], 256  }
  0x1b   :  { %327 = vsyncadd [#allocation3], 4294967040 }
  0x1c   :  { %328 = dma.done.wait [#allocation6], 1024  }
  0x1d   :  { %329 = vsyncadd [#allocation6], 4294966272  ;;  %v44_v0 = vld [vmem:[#allocation2] sm:$0xff]  ;;  %v45_v1 = vld [vmem:[#allocation2 + $0x8] sm:$0xff]  ;;  %v338_v5 = vmov 0.0   ;;  %vm339_vm0 = vmmov 0  }
  0x1e   :  { %46 = vadd.xlane.f32.xlu0 %v44_v0  ;;  %v52_v2 = vmul.f32 %v44_v0, %v44_v0  ;;  %v53_v3 = vmul.f32 %v45_v1, %v45_v1  ;;  %v254_v4 = vld [vmem:[#allocation5 + $0x38] sm:$0xff]   ;;  %225 = vmatprep.subr.bf16.mxu0 %v338_v5  ;;  %v255_v6 = vld [vmem:[#allocation5 + $0x30] sm:$0xff]   ;;  %v256_v7 = vld [vmem:[#allocation5 + $0x28] sm:$0xff]   ;;  %s340_s26 = smov [#allocation7]  }
  0x1f   :  { %226 = vmatpush3.bf16.msra.mxu0 %v254_v4  ;;  %v257_v8 = vld [vmem:[#allocation5 + $0x20] sm:$0xff]   ;;  %v258_v9 = vld [vmem:[#allocation5 + $0x18] sm:$0xff]   ;;  %241 = vmatprep.mubr.msk.bf16.mxu0 %vm339_vm0, %v338_v5  ;;  %v259_v10 = vld [vmem:[#allocation5 + $0x10] sm:$0xff]   ;;  %s194_s27 = sshll.u32 %s340_s26, 4  ;;  %s195_s27 = int_to_ptr.vmem [resolvable:$true] %s194_s27 }
  0x20   :  { %54 = vadd.xlane.f32.xlu1 %v52_v2  ;;  %227 = vmatprep.subr.bf16.mxu0 %v338_v5  ;;  %v260_v11 = vld [vmem:[#allocation5 + $0x8] sm:$0xff]   ;;  %v261_v12 = vld [vmem:[#allocation5] sm:$0xff]   ;;  %v207_v36 = vld [vmem:[%s381_s2] ss:$0 sm:$0xff]  ;;  %s306_s28 = scalar_lea.vmem %s195_s27, 256  ;;  %p311_p11 = scmp.lt.s32.totalorder %s195_s27, %s195_s27 }
  0x21   :  { %p307_p10 = scmp.ne.s32.totalorder %s195_s27, %s306_s28  ;;  %p312_p12 = scmp.lt.s32.totalorder %s306_s28, %s306_s28 }
  0x22   :  { %48 = vadd.xlane.f32.xlu0 %v45_v1 }
  0x23   :  { %228 = vmatpush3.bf16.msra.mxu0 %v255_v6  ;;  %p313_p13 = por %p312_p12, %p311_p11 }
  0x24   :  { %56 = vadd.xlane.f32.xlu1 %v53_v3  ;;  %229 = vmatprep.subr.bf16.mxu0 %v338_v5 }
  0x25   :  { %p314_p0 = pnand %p313_p13, %p307_p10 }
  0x27   :  { %230 = vmatpush3.bf16.msra.mxu0 %v256_v7 }
  0x28   :  { %231 = vmatprep.subr.bf16.mxu0 %v338_v5 }
  0x2b   :  { %232 = vmatpush3.bf16.msra.mxu0 %v257_v8 }
  0x2c   :  { %233 = vmatprep.subr.bf16.mxu0 %v338_v5 }
  0x2f   :  { %234 = vmatpush3.bf16.msra.mxu0 %v258_v9 }
  0x30   :  { %235 = vmatprep.subr.bf16.mxu0 %v338_v5 }
  0x33   :  { %236 = vmatpush3.bf16.msra.mxu0 %v259_v10 }
  0x34   :  { %237 = vmatprep.subr.bf16.mxu0 %v338_v5 }
  0x37   :  { %238 = vmatpush3.bf16.msra.mxu0 %v260_v11 }
  0x38   :  { %239 = vmatprep.subr.bf16.mxu0 %v338_v5 }
  0x3b   :  { %240 = vmatpush3.bf16.msra.mxu0 %v261_v12 }
  0xa7   :  { %v47_v13 = vpop.xlane.xlu0 %46 }
  0xa8   :  { %v50_v14 = vmul.f32 0.03125, %v47_v13 }
  0xa9   :  { %v55_v15 = vpop.xlane.xlu1 %54 }
  0xaa   :  { %v60_v16 = vmul.f32 %v50_v14, %v50_v14  ;;  %v58_v17 = vmul.f32 0.03125, %v55_v15  ;;  %v70_v30 = vsub.f32 %v44_v0, %v50_v14 }
  0xab   :  { %v49_v18 = vpop.xlane.xlu0 %48 }
  0xac   :  { %v62_v19 = vsub.f32 %v58_v17, %v60_v16  ;;  %v51_v20 = vmul.f32 0.03125, %v49_v18 }
  0xad   :  { %v57_v21 = vpop.xlane.xlu1 %56 }
  0xae   :  { %v64_v22 = vmax.f32 %v62_v19, 0.0  ;;  %v61_v23 = vmul.f32 %v51_v20, %v51_v20  ;;  %v59_v24 = vmul.f32 0.03125, %v57_v21  ;;  %v71_v31 = vsub.f32 %v45_v1, %v51_v20 }
  0xb0   :  { %v66_v25 = vadd.f32 1e-05, %v64_v22  ;;  %v63_v26 = vsub.f32 %v59_v24, %v61_v23 }
  0xb2   :  { %v65_v27 = vmax.f32 %v63_v26, 0.0  ;;  %262 = vrsqrt.f32 %v66_v25 }
  0xb4   :  { %v67_v28 = vadd.f32 1e-05, %v65_v27 }
  0xb6   :  { %264 = vrsqrt.f32 %v67_v28 }
  0xbf   :  { %v263_v29 = vpop.eup %262 }
  0xc0   :  { %v72_v33 = vmul.f32 %v263_v29, %v70_v30 }
  0xc3   :  { %v265_v32 = vpop.eup %264 }
  0xc4   :  { %v73_v34 = vmul.f32 %v265_v32, %v71_v31 }
  0xc6   :  { %v74_v35 = vpack.c.bf16 %v73_v34, %v72_v33 }
  0xc8   :  { %242 = vmatmul.mubr.bf16.vlgmr.msra.gmra.mxu0 %v74_v35 }
 0x188   :  { %v180_v37 = vpop.f32.mrf.mxu0 }
 0x189   :  { %v181_v38 = vadd.f32 %v207_v36, %v180_v37 }
 0x18a   :  { %v243_v39 = vpop.f32.mrf.mxu0 }
 0x18b   :  { %187 = vst [vmem:[#allocation7] sm:$0xff] %v181_v38 }
 0x18c   :  { %v183_v40 = vpop.f32.mrf.mxu0 }
 0x18d   :  { %v184_v41 = vadd.f32 %v207_v36, %v183_v40 }
 0x18e   :  { %v244_v42 = vpop.f32.mrf.mxu0 }
 0x18f   :  { %188 = vst [vmem:[#allocation7 + $0x8] sm:$0xff] %v184_v41 }
 0x190   :  { %317 = shalt.err (!%p314_p0)
}
 0x191   :  { %200 = dma.vmem_to_hbm [thread:$0]  %s195_s27, 256, %s382_s3, [#allocation4], %s333_s15, %s333_s15, %s334_s16  }
 0x192   :  { %330 = dma.done.wait [#allocation4], 256  }
 0x193   :  { %331 = vsyncadd [#allocation4], 4294967040 }
 0x194   :  { %204 = vsyncpa [#allocation3], 1 }
 0x195   :  { %205 = vsyncpa [#allocation6], 1 }
 0x196   :  { %206 = vsyncpa [#allocation4], 1 }

</bundles_post_ra>
